<compile_context>
chip_gen: v5e
topology: v5e:2x2
jax: 0.10.0
libtpu: 0.0.40
codegen_flags: <defaults>
</compile_context>

<pallas_src>
import functools

import jax
import jax.numpy as jnp
from jax.experimental import pallas as pl
from jax.experimental.pallas import tpu as pltpu

EPS = 1e-5
LANE = 128
COMPUTE_DTYPE = jnp.bfloat16            # MXU / HBM dtype; accumulation stays f32
VMEM_LIMIT_BYTES = 48 * 1024 * 1024     # safe on v5e/v6e (128 MiB) and v7x (64 MiB)


def _round_up(x, m):
    return (x + m - 1) // m * m


def _pick_tile_m(m):
    # big tiles when M is large (pipelining / roofline); otherwise one tile.
    return 512 if m >= 512 else _round_up(m, 16)


def _pick_tile_k(k_p):
    for cand in (512, 256, 128):
        if k_p % cand == 0:
            return min(cand, k_p)
    return k_p


# ----------------------------------------------------------------------------
# Pass 1 kernel: tiled matmul (conv-as-matmul) + per-tile BN statistics
# ----------------------------------------------------------------------------
def _conv_stats_kernel(p_ref, w_ref, y_ref, stats_ref, acc_ref):
    k = pl.program_id(1)

    @pl.when(k == 0)
    def _init():
        acc_ref[...] = jnp.zeros_like(acc_ref)

    acc_ref[...] += jnp.dot(p_ref[...], w_ref[...],
                            preferred_element_type=jnp.float32)

    @pl.when(k == pl.num_programs(1) - 1)
    def _finalize():
        y = acc_ref[...]
        y_ref[...] = y.astype(y_ref.dtype)
        s = jnp.sum(y, axis=0, keepdims=True)          # (1, CoutP)
        ss = jnp.sum(y * y, axis=0, keepdims=True)     # (1, CoutP)
        pad = jnp.zeros((6, y.shape[1]), jnp.float32)
        stats_ref[...] = jnp.concatenate([s, ss, pad], axis=0)[None]


# ----------------------------------------------------------------------------
# Pass 2 kernel: apply BN affine (+ residual) (+ ReLU), tiled over M
# ----------------------------------------------------------------------------
def _make_bn_apply_kernel(has_residual, apply_relu):
    def kernel(y_ref, scale_ref, shift_ref, *rest):
        if has_residual:
            res_ref, o_ref = rest
        else:
            (o_ref,) = rest
        out = y_ref[...] * scale_ref[...] + shift_ref[...]
        if has_residual:
            out = out + res_ref[...]
        if apply_relu:
            out = jnp.maximum(out, 0.0)
        o_ref[...] = out.astype(o_ref.dtype)

    return kernel


# ----------------------------------------------------------------------------
# Fused conv (im2col matmul) + training-mode BN (+ residual) (+ ReLU)
# ----------------------------------------------------------------------------
def conv_bn_act(patches, w_mat, gamma, beta, *, residual=None, relu=True,
                out_dtype=jnp.float32, eps=EPS):
    """patches: [M, K], w_mat: [K, Cout], gamma/beta: [Cout], residual: [M, Cout]."""
    m, k = patches.shape
    cout = w_mat.shape[1]

    cout_p = _round_up(cout, LANE)
    k_p = _round_up(k, LANE)
    tm = _pick_tile_m(m)
    m_p = _round_up(m, tm)
    tk = _pick_tile_k(k_p)
    num_m = m_p // tm
    num_k = k_p // tk

    # bf16 MXU inputs; zero-padded rows/cols contribute nothing (exactly zero).
    p = jnp.pad(patches.astype(COMPUTE_DTYPE), ((0, m_p - m), (0, k_p - k)))
    w = jnp.pad(w_mat.astype(COMPUTE_DTYPE), ((0, k_p - k), (0, cout_p - cout)))

    y, stats = pl.pallas_call(
        _conv_stats_kernel,
        out_shape=(jax.ShapeDtypeStruct((m_p, cout_p), jnp.float32),
                   jax.ShapeDtypeStruct((num_m, 8, cout_p), jnp.float32)),
        grid_spec=pltpu.PrefetchScalarGridSpec(
            num_scalar_prefetch=0,
            grid=(num_m, num_k),
            in_specs=[pl.BlockSpec((tm, tk), lambda i, j: (i, j)),
                      pl.BlockSpec((tk, cout_p), lambda i, j: (j, 0))],
            out_specs=[pl.BlockSpec((tm, cout_p), lambda i, j: (i, 0)),
                       pl.BlockSpec((1, 8, cout_p), lambda i, j: (i, 0, 0))],
            scratch_shapes=[pltpu.VMEM((tm, cout_p), jnp.float32)]),
        compiler_params=pltpu.CompilerParams(
            dimension_semantics=("parallel", "arbitrary"),
            vmem_limit_bytes=VMEM_LIMIT_BYTES),
    )(p, w)

    # Exact batch statistics over the true M rows (padded rows are all-zero and
    # contribute nothing to the sums). Tiny per-channel math in plain JAX.
    col_sum = jnp.sum(stats[:, 0, :], axis=0)
    col_sqsum = jnp.sum(stats[:, 1, :], axis=0)
    mean = col_sum / m
    var = jnp.maximum(col_sqsum / m - mean * mean, 0.0)   # guard cancellation
    inv_std = jax.lax.rsqrt(var + eps)
    gamma_p = jnp.pad(gamma.astype(jnp.float32), (0, cout_p - cout))
    beta_p = jnp.pad(beta.astype(jnp.float32), (0, cout_p - cout))
    scale = (gamma_p * inv_std).reshape(1, cout_p)
    shift = (beta_p - mean * gamma_p * inv_std).reshape(1, cout_p)

    has_res = residual is not None
    args = [y, scale, shift]
    in_specs = [pl.BlockSpec((tm, cout_p), lambda i: (i, 0)),
                pl.BlockSpec((1, cout_p), lambda i: (0, 0)),
                pl.BlockSpec((1, cout_p), lambda i: (0, 0))]
    if has_res:
        r = jnp.pad(residual.astype(jnp.float32),
                    ((0, m_p - m), (0, cout_p - cout)))
        args.append(r)
        in_specs.append(pl.BlockSpec((tm, cout_p), lambda i: (i, 0)))

    out = pl.pallas_call(
        _make_bn_apply_kernel(has_res, relu),
        out_shape=jax.ShapeDtypeStruct((m_p, cout_p), out_dtype),
        grid_spec=pltpu.PrefetchScalarGridSpec(
            num_scalar_prefetch=0,
            grid=(num_m,),
            in_specs=in_specs,
            out_specs=pl.BlockSpec((tm, cout_p), lambda i: (i, 0))),
        compiler_params=pltpu.CompilerParams(
            dimension_semantics=("parallel",),
            vmem_limit_bytes=VMEM_LIMIT_BYTES),
    )(*args)

    return out[:m, :cout]


# ----------------------------------------------------------------------------
# Plain-JAX glue: im2col, weight reshaping, block wiring
# ----------------------------------------------------------------------------
def im2col_3x3(x_nhwc, stride=1, pad=1):
    """x: [N, H, W, C] -> patches [N*Ho*Wo, 9*C] (kh, kw, cin order)."""
    n, h, w, c = x_nhwc.shape
    xp = jnp.pad(x_nhwc, ((0, 0), (pad, pad), (pad, pad), (0, 0)))
    ho = (h + 2 * pad - 3) // stride + 1
    wo = (w + 2 * pad - 3) // stride + 1
    cols = []
    for kh in range(3):
        for kw in range(3):
            cols.append(xp[:, kh:kh + stride * ho:stride, kw:kw + stride * wo:stride, :])
    patches = jnp.concatenate(cols, axis=-1)
    return patches.reshape(n * ho * wo, 9 * c), (n, ho, wo)


def conv3x3_weight_to_mat(w_oihw):
    """[Cout, Cin, 3, 3] -> [3*3*Cin, Cout] matching im2col (kh, kw, cin) order."""
    return jnp.transpose(w_oihw, (2, 3, 1, 0)).reshape(-1, w_oihw.shape[0])


def conv1x1_weight_to_mat(w_oihw):
    """[Cout, Cin, 1, 1] -> [Cin, Cout]."""
    return jnp.transpose(w_oihw[:, :, 0, 0], (1, 0))


def basic_block_forward(x_nchw, params, in_planes, planes, stride):
    # NCHW (PyTorch) -> NHWC (kernel layout)
    x = jnp.transpose(x_nchw, (0, 2, 3, 1)).astype(jnp.float32)
    n, h, w, _ = x.shape
    x_bf = x.astype(COMPUTE_DTYPE)

    # conv1 (3x3, stride) + bn1 + relu -> bf16 intermediate (only feeds conv2)
    p1, (_, ho, wo) = im2col_3x3(x_bf, stride=stride, pad=1)
    out1 = conv_bn_act(p1, conv3x3_weight_to_mat(params["w1"]),
                       params["g1"], params["b1"],
                       relu=True, out_dtype=COMPUTE_DTYPE)
    out1_img = out1.reshape(n, ho, wo, planes)

    # shortcut branch (kept f32: it is the residual added in the epilogue)
    if stride != 1 or in_planes != planes:
        xs = x_bf[:, ::stride, ::stride, :].reshape(n * ho * wo, in_planes)
        shortcut = conv_bn_act(xs, conv1x1_weight_to_mat(params["ws"]),
                               params["gs"], params["bs"],
                               relu=False, out_dtype=jnp.float32)
    else:
        shortcut = x.reshape(n * h * w, planes)

    # conv2 (3x3, stride 1) + bn2 + residual add + relu (fused epilogue)
    p2, _ = im2col_3x3(out1_img, stride=1, pad=1)
    out = conv_bn_act(p2, conv3x3_weight_to_mat(params["w2"]),
                      params["g2"], params["b2"],
                      residual=shortcut, relu=True, out_dtype=jnp.float32)

    out = out.reshape(n, ho, wo, planes)
    return jnp.transpose(out, (0, 3, 1, 2))   # NHWC -> NCHW


# ----------------------------------------------------------------------------
# Pure-JAX reference (emulates the kernel's bf16 matmul inputs)
# ----------------------------------------------------------------------------
def _bf16(a):
    return a.astype(jnp.bfloat16).astype(jnp.float32)


def _ref_conv(x, w, stride, pad):
    return jax.lax.conv_general_dilated(
        x, w, (stride, stride), [(pad, pad), (pad, pad)],
        dimension_numbers=("NCHW", "OIHW", "NCHW"))


def _ref_bn(y, g, b, eps=EPS):
    mean = jnp.mean(y, axis=(0, 2, 3), keepdims=True)
    var = jnp.mean(jnp.square(y - mean), axis=(0, 2, 3), keepdims=True)
    return (y - mean) * jax.lax.rsqrt(var + eps) * g.reshape(1, -1, 1, 1) \
        + b.reshape(1, -1, 1, 1)


def basic_block_reference(x_nchw, params, in_planes, planes, stride):
    x = x_nchw.astype(jnp.float32)
    xb = _bf16(x)
    out = jax.nn.relu(_ref_bn(_ref_conv(xb, _bf16(params["w1"]), stride, 1),
                              params["g1"], params["b1"]))
    out = _bf16(out)
    out = _ref_bn(_ref_conv(out, _bf16(params["w2"]), 1, 1),
                  params["g2"], params["b2"])
    if stride != 1 or in_planes != planes:
        sc = _ref_bn(_ref_conv(xb, _bf16(params["ws"]), stride, 0),
                     params["gs"], params["bs"])
    else:
        sc = x
    return jax.nn.relu(out + sc)


# ----------------------------------------------------------------------------
# Deterministic parameter init + run
# ----------------------------------------------------------------------------
def init_params(key, in_planes, planes, stride):
    k1, k2, k3 = jax.random.split(key, 3)
    params = {
        "w1": 0.1 * jax.random.normal(k1, (planes, in_planes, 3, 3), jnp.float32),
        "g1": jnp.ones((planes,), jnp.float32),
        "b1": jnp.zeros((planes,), jnp.float32),
        "w2": 0.1 * jax.random.normal(k2, (planes, planes, 3, 3), jnp.float32),
        "g2": jnp.ones((planes,), jnp.float32),
        "b2": jnp.zeros((planes,), jnp.float32),
    }
    if stride != 1 or in_planes != planes:
        params["ws"] = 0.1 * jax.random.normal(k3, (planes, in_planes, 1, 1), jnp.float32)
        params["gs"] = jnp.ones((planes,), jnp.float32)
        params["bs"] = jnp.zeros((planes,), jnp.float32)
    return params


if __name__ == "__main__":
    batch, spatial = 2, 16
    key = jax.random.PRNGKey(0)
    kx, kp1, kp2 = jax.random.split(key, 3)

    # Config 1: downsampling block (stride=2, 4 -> 8 channels, 1x1-conv shortcut)
    in_planes, planes, stride = 4, 8, 2
    x = jax.random.normal(kx, (batch, in_planes, spatial, spatial), jnp.float32)
    params = init_params(kp1, in_planes, planes, stride)
    fwd = jax.jit(functools.partial(basic_block_forward,
                                    in_planes=in_planes, planes=planes, stride=stride))
    out = fwd(x, params)
    jax.block_until_ready(out)
    ref = basic_block_reference(x, params, in_planes, planes, stride)
    assert out.shape == ref.shape == (batch, planes, spatial // stride, spatial // stride)
    assert jnp.allclose(out, ref, rtol=1e-2, atol=1e-2), \
        f"max abs err {jnp.max(jnp.abs(out - ref))}"

    # Config 2: identity-shortcut block (stride=1, in_planes == planes)
    in_planes2, planes2, stride2 = 8, 8, 1
    x2 = jax.random.normal(kx, (batch, in_planes2, spatial, spatial), jnp.float32)
    params2 = init_params(kp2, in_planes2, planes2, stride2)
    fwd2 = jax.jit(functools.partial(basic_block_forward,
                                     in_planes=in_planes2, planes=planes2, stride=stride2))
    out2 = fwd2(x2, params2)
    jax.block_until_ready(out2)
    ref2 = basic_block_reference(x2, params2, in_planes2, planes2, stride2)
    assert out2.shape == ref2.shape == (batch, planes2, spatial, spatial)
    assert jnp.allclose(out2, ref2, rtol=1e-2, atol=1e-2), \
        f"max abs err {jnp.max(jnp.abs(out2 - ref2))}"

    print("KERNEL_OK")
</pallas_src>

<mosaic_0001>
module attributes {stable_mosaic.version = 11 : i64} {
  func.func @_conv_stats_kernel(%arg0: i32, %arg1: i32, %arg2: memref<128x128xbf16, #tpu.memory_space<vmem>>, %arg3: memref<128x128xbf16, #tpu.memory_space<vmem>>, %arg4: memref<128x128xf32, #tpu.memory_space<vmem>>, %arg5: memref<1x8x128xf32, #tpu.memory_space<vmem>>, %arg6: memref<128x128xf32, #tpu.memory_space<vmem>>) attributes {dimension_semantics = [#tpu.dimension_semantics<parallel>, #tpu.dimension_semantics<arbitrary>], iteration_bounds = array<i64: 1, 1>, scalar_prefetch = 0 : i64, scratch_operands = 1 : i64, tpu.core_type = #tpu.core_type<tc>, window_params = [{transform_indices = @transform_0, window_bounds = array<i64: 128, 128>}, {transform_indices = @transform_1, window_bounds = array<i64: 128, 128>}, {transform_indices = @transform_2, window_bounds = array<i64: 128, 128>}, {transform_indices = @transform_3, window_bounds = array<i64: 1, 8, 128>}]} {
    %c0_i32 = arith.constant 0 : i32
    %0 = arith.cmpi eq, %arg1, %c0_i32 : i32
    %1 = arith.extui %0 : i1 to i32
    %c0_i32_0 = arith.constant 0 : i32
    %2 = arith.cmpi ne, %1, %c0_i32_0 : i32
    scf.if %2 {
      %cst_10 = arith.constant 0.000000e+00 : f32
      %12 = vector.broadcast %cst_10 : f32 to vector<128x128xf32>
      %c0_11 = arith.constant 0 : index
      %c0_12 = arith.constant 0 : index
      %13 = vector.load %arg6[%c0_11, %c0_12] : memref<128x128xf32, #tpu.memory_space<vmem>>, vector<128x128xf32>
      tpu.vector_store %arg6[%c0_11, %c0_12], %12 {strides = array<i32>} : memref<128x128xf32, #tpu.memory_space<vmem>>, vector<128x128xf32>,
    } else {
    }
    %c0 = arith.constant 0 : index
    %c0_1 = arith.constant 0 : index
    %3 = vector.load %arg6[%c0, %c0_1] : memref<128x128xf32, #tpu.memory_space<vmem>>, vector<128x128xf32>
    %c0_2 = arith.constant 0 : index
    %c0_3 = arith.constant 0 : index
    %4 = vector.load %arg2[%c0_2, %c0_3] : memref<128x128xbf16, #tpu.memory_space<vmem>>, vector<128x128xbf16>
    %c0_4 = arith.constant 0 : index
    %c0_5 = arith.constant 0 : index
    %5 = vector.load %arg3[%c0_4, %c0_5] : memref<128x128xbf16, #tpu.memory_space<vmem>>, vector<128x128xbf16>
    %cst = arith.constant dense<0.000000e+00> : vector<128x128xf32>
    %6 = tpu.matmul %4, %5, %cst {dimension_numbers = #tpu.dot_dimension_numbers<[1], [0], [0], [1], [0, 0, 1, 1], [], []>} : vector<128x128xbf16>, vector<128x128xbf16>, vector<128x128xf32> -> vector<128x128xf32>
    %7 = arith.addf %3, %6 : vector<128x128xf32>
    %c0_6 = arith.constant 0 : index
    %c0_7 = arith.constant 0 : index
    %8 = vector.load %arg6[%c0_6, %c0_7] : memref<128x128xf32, #tpu.memory_space<vmem>>, vector<128x128xf32>
    tpu.vector_store %arg6[%c0_6, %c0_7], %7 {strides = array<i32>} : memref<128x128xf32, #tpu.memory_space<vmem>>, vector<128x128xf32>,
    %c0_i32_8 = arith.constant 0 : i32
    %9 = arith.cmpi eq, %arg1, %c0_i32_8 : i32
    %10 = arith.extui %9 : i1 to i32
    %c0_i32_9 = arith.constant 0 : i32
    %11 = arith.cmpi ne, %10, %c0_i32_9 : i32
    scf.if %11 {
      %c0_10 = arith.constant 0 : index
      %c0_11 = arith.constant 0 : index
      %12 = vector.load %arg6[%c0_10, %c0_11] : memref<128x128xf32, #tpu.memory_space<vmem>>, vector<128x128xf32>
      %c0_12 = arith.constant 0 : index
      %c0_13 = arith.constant 0 : index
      %13 = vector.load %arg4[%c0_12, %c0_13] : memref<128x128xf32, #tpu.memory_space<vmem>>, vector<128x128xf32>
      tpu.vector_store %arg4[%c0_12, %c0_13], %12 {strides = array<i32>} : memref<128x128xf32, #tpu.memory_space<vmem>>, vector<128x128xf32>,
      %cst_14 = arith.constant dense<0.000000e+00> : vector<128xf32>
      %14 = vector.multi_reduction <add>, %12, %cst_14 [0] : vector<128x128xf32> to vector<128xf32>
      %15 = vector.shape_cast %14 : vector<128xf32> to vector<1x128xf32>
      %16 = arith.mulf %12, %12 : vector<128x128xf32>
      %cst_15 = arith.constant dense<0.000000e+00> : vector<128xf32>
      %17 = vector.multi_reduction <add>, %16, %cst_15 [0] : vector<128x128xf32> to vector<128xf32>
      %18 = vector.shape_cast %17 : vector<128xf32> to vector<1x128xf32>
      %cst_16 = arith.constant 0.000000e+00 : f32
      %19 = vector.broadcast %cst_16 : f32 to vector<6x128xf32>
      %20 = tpu.concatenate %15, %18, %19 in 0 : vector<1x128xf32>, vector<1x128xf32>, vector<6x128xf32> -> vector<8x128xf32>
      %21 = vector.shape_cast %20 : vector<8x128xf32> to vector<1x8x128xf32>
      %c0_17 = arith.constant 0 : index
      %c0_18 = arith.constant 0 : index
      %c0_19 = arith.constant 0 : index
      %22 = vector.load %arg5[%c0_17, %c0_18, %c0_19] : memref<1x8x128xf32, #tpu.memory_space<vmem>>, vector<1x8x128xf32>
      tpu.vector_store %arg5[%c0_17, %c0_18, %c0_19], %21 {strides = array<i32>} : memref<1x8x128xf32, #tpu.memory_space<vmem>>, vector<1x8x128xf32>,
    } else {
    }
    return
  }
  func.func @transform_0(%arg0: i32, %arg1: i32) -> (i32, i32) {
    %c0_i32 = arith.constant 0 : i32
    return %arg0, %arg1 : i32, i32
  }
  func.func @transform_1(%arg0: i32, %arg1: i32) -> (i32, i32) {
    %c0_i32 = arith.constant 0 : i32
    %c0_i32_0 = arith.constant 0 : i32
    return %arg1, %c0_i32 : i32, i32
  }
  func.func @transform_2(%arg0: i32, %arg1: i32) -> (i32, i32) {
    %c0_i32 = arith.constant 0 : i32
    %c0_i32_0 = arith.constant 0 : i32
    return %arg0, %c0_i32 : i32, i32
  }
  func.func @transform_3(%arg0: i32, %arg1: i32) -> (i32, i32, i32) {
    %c0_i32 = arith.constant 0 : i32
    %c0_i32_0 = arith.constant 0 : i32
    %c0_i32_1 = arith.constant 0 : i32
    return %arg0, %c0_i32, %c0_i32_0 : i32, i32, i32
  }
}

module attributes {stable_mosaic.version = 11 : i64} {
  func.func @kernel(%arg0: i32, %arg1: memref<128x128xf32, #tpu.memory_space<vmem>>, %arg2: memref<1x128xf32, #tpu.memory_space<vmem>>, %arg3: memref<1x128xf32, #tpu.memory_space<vmem>>, %arg4: memref<128x128xbf16, #tpu.memory_space<vmem>>) attributes {dimension_semantics = [#tpu.dimension_semantics<parallel>], iteration_bounds = array<i64: 1>, scalar_prefetch = 0 : i64, scratch_operands = 0 : i64, tpu.core_type = #tpu.core_type<tc>, window_params = [{transform_indices = @transform_0, window_bounds = array<i64: 128, 128>}, {pipeline_mode = #tpu.pipeline_mode<synchronous>, transform_indices = @transform_1, window_bounds = array<i64: 1, 128>}, {pipeline_mode = #tpu.pipeline_mode<synchronous>, transform_indices = @transform_2, window_bounds = array<i64: 1, 128>}, {transform_indices = @transform_3, window_bounds = array<i64: 128, 128>}]} {
    %c0 = arith.constant 0 : index
    %c0_0 = arith.constant 0 : index
    %0 = vector.load %arg1[%c0, %c0_0] : memref<128x128xf32, #tpu.memory_space<vmem>>, vector<128x128xf32>
    %c0_1 = arith.constant 0 : index
    %c0_2 = arith.constant 0 : index
    %1 = vector.load %arg2[%c0_1, %c0_2] : memref<1x128xf32, #tpu.memory_space<vmem>>, vector<1x128xf32>
    %2 = vector.broadcast %1 : vector<1x128xf32> to vector<128x128xf32>
    %3 = arith.mulf %0, %2 : vector<128x128xf32>
    %c0_3 = arith.constant 0 : index
    %c0_4 = arith.constant 0 : index
    %4 = vector.load %arg3[%c0_3, %c0_4] : memref<1x128xf32, #tpu.memory_space<vmem>>, vector<1x128xf32>
    %5 = vector.broadcast %4 : vector<1x128xf32> to vector<128x128xf32>
    %6 = arith.addf %3, %5 : vector<128x128xf32>
    %cst = arith.constant 0.000000e+00 : f32
    %7 = vector.broadcast %cst : f32 to vector<128x128xf32>
    %8 = arith.maximumf %6, %7 : vector<128x128xf32>
    %9 = arith.truncf %8 : vector<128x128xf32> to vector<128x128xbf16>
    %c0_5 = arith.constant 0 : index
    %c0_6 = arith.constant 0 : index
    %10 = vector.load %arg4[%c0_5, %c0_6] : memref<128x128xbf16, #tpu.memory_space<vmem>>, vector<128x128xbf16>
    tpu.vector_store %arg4[%c0_5, %c0_6], %9 {strides = array<i32>} : memref<128x128xbf16, #tpu.memory_space<vmem>>, vector<128x128xbf16>,
    return
  }
  func.func @transform_0(%arg0: i32) -> (i32, i32) {
    %c0_i32 = arith.constant 0 : i32
    %c0_i32_0 = arith.constant 0 : i32
    return %arg0, %c0_i32 : i32, i32
  }
  func.func @transform_1(%arg0: i32) -> (i32, i32) {
    %c0_i32 = arith.constant 0 : i32
    %c0_i32_0 = arith.constant 0 : i32
    %c0_i32_1 = arith.constant 0 : i32
    return %c0_i32, %c0_i32_0 : i32, i32
  }
  func.func @transform_2(%arg0: i32) -> (i32, i32) {
    %c0_i32 = arith.constant 0 : i32
    %c0_i32_0 = arith.constant 0 : i32
    %c0_i32_1 = arith.constant 0 : i32
    return %c0_i32, %c0_i32_0 : i32, i32
  }
  func.func @transform_3(%arg0: i32) -> (i32, i32) {
    %c0_i32 = arith.constant 0 : i32
    %c0_i32_0 = arith.constant 0 : i32
    return %arg0, %c0_i32 : i32, i32
  }
}

module attributes {stable_mosaic.version = 11 : i64} {
  func.func @kernel(%arg0: i32, %arg1: memref<128x128xf32, #tpu.memory_space<vmem>>, %arg2: memref<1x128xf32, #tpu.memory_space<vmem>>, %arg3: memref<1x128xf32, #tpu.memory_space<vmem>>, %arg4: memref<128x128xf32, #tpu.memory_space<vmem>>, %arg5: memref<128x128xf32, #tpu.memory_space<vmem>>) attributes {dimension_semantics = [#tpu.dimension_semantics<parallel>], iteration_bounds = array<i64: 1>, scalar_prefetch = 0 : i64, scratch_operands = 0 : i64, tpu.core_type = #tpu.core_type<tc>, window_params = [{transform_indices = @transform_0, window_bounds = array<i64: 128, 128>}, {pipeline_mode = #tpu.pipeline_mode<synchronous>, transform_indices = @transform_1, window_bounds = array<i64: 1, 128>}, {pipeline_mode = #tpu.pipeline_mode<synchronous>, transform_indices = @transform_2, window_bounds = array<i64: 1, 128>}, {transform_indices = @transform_3, window_bounds = array<i64: 128, 128>}, {transform_indices = @transform_4, window_bounds = array<i64: 128, 128>}]} {
    %c0 = arith.constant 0 : index
    %c0_0 = arith.constant 0 : index
    %0 = vector.load %arg1[%c0, %c0_0] : memref<128x128xf32, #tpu.memory_space<vmem>>, vector<128x128xf32>
    %c0_1 = arith.constant 0 : index
    %c0_2 = arith.constant 0 : index
    %1 = vector.load %arg2[%c0_1, %c0_2] : memref<1x128xf32, #tpu.memory_space<vmem>>, vector<1x128xf32>
    %2 = vector.broadcast %1 : vector<1x128xf32> to vector<128x128xf32>
    %3 = arith.mulf %0, %2 : vector<128x128xf32>
    %c0_3 = arith.constant 0 : index
    %c0_4 = arith.constant 0 : index
    %4 = vector.load %arg3[%c0_3, %c0_4] : memref<1x128xf32, #tpu.memory_space<vmem>>, vector<1x128xf32>
    %5 = vector.broadcast %4 : vector<1x128xf32> to vector<128x128xf32>
    %6 = arith.addf %3, %5 : vector<128x128xf32>
    %c0_5 = arith.constant 0 : index
    %c0_6 = arith.constant 0 : index
    %7 = vector.load %arg4[%c0_5, %c0_6] : memref<128x128xf32, #tpu.memory_space<vmem>>, vector<128x128xf32>
    %8 = arith.addf %6, %7 : vector<128x128xf32>
    %cst = arith.constant 0.000000e+00 : f32
    %9 = vector.broadcast %cst : f32 to vector<128x128xf32>
    %10 = arith.maximumf %8, %9 : vector<128x128xf32>
    %c0_7 = arith.constant 0 : index
    %c0_8 = arith.constant 0 : index
    %11 = vector.load %arg5[%c0_7, %c0_8] : memref<128x128xf32, #tpu.memory_space<vmem>>, vector<128x128xf32>
    tpu.vector_store %arg5[%c0_7, %c0_8], %10 {strides = array<i32>} : memref<128x128xf32, #tpu.memory_space<vmem>>, vector<128x128xf32>,
    return
  }
  func.func @transform_0(%arg0: i32) -> (i32, i32) {
    %c0_i32 = arith.constant 0 : i32
    %c0_i32_0 = arith.constant 0 : i32
    return %arg0, %c0_i32 : i32, i32
  }
  func.func @transform_1(%arg0: i32) -> (i32, i32) {
    %c0_i32 = arith.constant 0 : i32
    %c0_i32_0 = arith.constant 0 : i32
    %c0_i32_1 = arith.constant 0 : i32
    return %c0_i32, %c0_i32_0 : i32, i32
  }
  func.func @transform_2(%arg0: i32) -> (i32, i32) {
    %c0_i32 = arith.constant 0 : i32
    %c0_i32_0 = arith.constant 0 : i32
    %c0_i32_1 = arith.constant 0 : i32
    return %c0_i32, %c0_i32_0 : i32, i32
  }
  func.func @transform_3(%arg0: i32) -> (i32, i32) {
    %c0_i32 = arith.constant 0 : i32
    %c0_i32_0 = arith.constant 0 : i32
    return %arg0, %c0_i32 : i32, i32
  }
  func.func @transform_4(%arg0: i32) -> (i32, i32) {
    %c0_i32 = arith.constant 0 : i32
    %c0_i32_0 = arith.constant 0 : i32
    return %arg0, %c0_i32 : i32, i32
  }
}

module attributes {stable_mosaic.version = 11 : i64} {
  func.func @kernel(%arg0: i32, %arg1: memref<128x128xf32, #tpu.memory_space<vmem>>, %arg2: memref<1x128xf32, #tpu.memory_space<vmem>>, %arg3: memref<1x128xf32, #tpu.memory_space<vmem>>, %arg4: memref<128x128xf32, #tpu.memory_space<vmem>>) attributes {dimension_semantics = [#tpu.dimension_semantics<parallel>], iteration_bounds = array<i64: 1>, scalar_prefetch = 0 : i64, scratch_operands = 0 : i64, tpu.core_type = #tpu.core_type<tc>, window_params = [{transform_indices = @transform_0, window_bounds = array<i64: 128, 128>}, {pipeline_mode = #tpu.pipeline_mode<synchronous>, transform_indices = @transform_1, window_bounds = array<i64: 1, 128>}, {pipeline_mode = #tpu.pipeline_mode<synchronous>, transform_indices = @transform_2, window_bounds = array<i64: 1, 128>}, {transform_indices = @transform_3, window_bounds = array<i64: 128, 128>}]} {
    %c0 = arith.constant 0 : index
    %c0_0 = arith.constant 0 : index
    %0 = vector.load %arg1[%c0, %c0_0] : memref<128x128xf32, #tpu.memory_space<vmem>>, vector<128x128xf32>
    %c0_1 = arith.constant 0 : index
    %c0_2 = arith.constant 0 : index
    %1 = vector.load %arg2[%c0_1, %c0_2] : memref<1x128xf32, #tpu.memory_space<vmem>>, vector<1x128xf32>
    %2 = vector.broadcast %1 : vector<1x128xf32> to vector<128x128xf32>
    %3 = arith.mulf %0, %2 : vector<128x128xf32>
    %c0_3 = arith.constant 0 : index
    %c0_4 = arith.constant 0 : index
    %4 = vector.load %arg3[%c0_3, %c0_4] : memref<1x128xf32, #tpu.memory_space<vmem>>, vector<1x128xf32>
    %5 = vector.broadcast %4 : vector<1x128xf32> to vector<128x128xf32>
    %6 = arith.addf %3, %5 : vector<128x128xf32>
    %c0_5 = arith.constant 0 : index
    %c0_6 = arith.constant 0 : index
    %7 = vector.load %arg4[%c0_5, %c0_6] : memref<128x128xf32, #tpu.memory_space<vmem>>, vector<128x128xf32>
    tpu.vector_store %arg4[%c0_5, %c0_6], %6 {strides = array<i32>} : memref<128x128xf32, #tpu.memory_space<vmem>>, vector<128x128xf32>,
    return
  }
  func.func @transform_0(%arg0: i32) -> (i32, i32) {
    %c0_i32 = arith.constant 0 : i32
    %c0_i32_0 = arith.constant 0 : i32
    return %arg0, %c0_i32 : i32, i32
  }
  func.func @transform_1(%arg0: i32) -> (i32, i32) {
    %c0_i32 = arith.constant 0 : i32
    %c0_i32_0 = arith.constant 0 : i32
    %c0_i32_1 = arith.constant 0 : i32
    return %c0_i32, %c0_i32_0 : i32, i32
  }
  func.func @transform_2(%arg0: i32) -> (i32, i32) {
    %c0_i32 = arith.constant 0 : i32
    %c0_i32_0 = arith.constant 0 : i32
    %c0_i32_1 = arith.constant 0 : i32
    return %c0_i32, %c0_i32_0 : i32, i32
  }
  func.func @transform_3(%arg0: i32) -> (i32, i32) {
    %c0_i32 = arith.constant 0 : i32
    %c0_i32_0 = arith.constant 0 : i32
    return %arg0, %c0_i32 : i32, i32
  }
}

</mosaic_0001>

<bundles_post_ra>
// kernel: basic_block_forward.7
= control target key start
LH: loop header
LB: loop body
LE: loop exit
PB: predicated region body
PF: predicated region fallthrough
CT: control target
= control target key end

     0   :  { %s287_s0 = inlined_call_operand.vmem [shape: f32[128,128], index: 0, kind: input, shape index: {}]   ;;  %s288_s1 = inlined_call_operand.vmem [shape: f32[1,128], index: 1, kind: input, shape index: {}]   ;;  %s289_s2 = inlined_call_operand.vmem [shape: f32[1,128], index: 2, kind: input, shape index: {}]   ;;  %s290_s3 = inlined_call_operand.vmem [shape: bf16[128,128], index: 3, kind: output, shape index: {}]  }
   0x1   :  { %v14_v0 = vld [vmem:[%s287_s0] sm:$0xff]  ;;  %v15_v1 = vld [vmem:[%s287_s0 + $0x8] sm:$0xff]  ;;  %v16_v4 = vld [vmem:[%s287_s0 + $0x10] sm:$0xff] }
   0x2   :  { %v169_v2 = vld [vmem:[%s288_s1] ss:$0 sm:$0xff]  ;;  %v17_v5 = vld [vmem:[%s287_s0 + $0x18] sm:$0xff]  ;;  %v19_v11 = vld [vmem:[%s287_s0 + $0x28] sm:$0xff] }
   0x3   :  { %v203_v3 = vld [vmem:[%s289_s2] ss:$0 sm:$0xff]  ;;  %v34_v7 = vmul.f32 %v169_v2, %v14_v0  ;;  %v35_v8 = vmul.f32 %v169_v2, %v15_v1  ;;  %v36_v9 = vmul.f32 %v169_v2, %v16_v4  ;;  %v37_v10 = vmul.f32 %v169_v2, %v17_v5  ;;  %v20_v12 = vld [vmem:[%s287_s0 + $0x30] sm:$0xff]  ;;  %v21_v13 = vld [vmem:[%s287_s0 + $0x38] sm:$0xff] }
   0x4   :  { %v18_v6 = vld [vmem:[%s287_s0 + $0x20] sm:$0xff]  ;;  %v39_v15 = vmul.f32 %v169_v2, %v19_v11  ;;  %v40_v16 = vmul.f32 %v169_v2, %v20_v12  ;;  %v41_v17 = vmul.f32 %v169_v2, %v21_v13  ;;  %v23_v27 = vld [vmem:[%s287_s0 + $0x48] sm:$0xff]  ;;  %v24_v32 = vld [vmem:[%s287_s0 + $0x50] sm:$0xff] }
   0x5   :  { %v38_v14 = vmul.f32 %v169_v2, %v18_v6  ;;  %v54_v18 = vadd.f32 %v203_v3, %v34_v7  ;;  %v55_v19 = vadd.f32 %v203_v3, %v35_v8  ;;  %v56_v20 = vadd.f32 %v203_v3, %v36_v9  ;;  %v22_v26 = vld [vmem:[%s287_s0 + $0x40] sm:$0xff]  ;;  %v25_v33 = vld [vmem:[%s287_s0 + $0x58] sm:$0xff]  ;;  %v27_v39 = vld [vmem:[%s287_s0 + $0x68] sm:$0xff] }
   0x6   :  { %v57_v21 = vadd.f32 %v203_v3, %v37_v10  ;;  %v59_v23 = vadd.f32 %v203_v3, %v39_v15  ;;  %v60_v24 = vadd.f32 %v203_v3, %v40_v16  ;;  %v61_v25 = vadd.f32 %v203_v3, %v41_v17  ;;  %v26_v38 = vld [vmem:[%s287_s0 + $0x60] sm:$0xff]  ;;  %v28_v44 = vld [vmem:[%s287_s0 + $0x70] sm:$0xff]  ;;  %v29_v45 = vld [vmem:[%s287_s0 + $0x78] sm:$0xff] }
   0x7   :  { %v58_v22 = vadd.f32 %v203_v3, %v38_v14  ;;  %v70_v28 = vmax.f32 %v54_v18, 0.0  ;;  %v71_v29 = vmax.f32 %v55_v19, 0.0  ;;  %v72_v30 = vmax.f32 %v56_v20, 0.0 }
   0x8   :  { %v73_v31 = vmax.f32 %v57_v21, 0.0  ;;  %v75_v35 = vmax.f32 %v59_v23, 0.0  ;;  %v76_v36 = vmax.f32 %v60_v24, 0.0  ;;  %v77_v37 = vmax.f32 %v61_v25, 0.0 }
   0x9   :  { %v74_v34 = vmax.f32 %v58_v22, 0.0  ;;  %v125_v40 = vpack.c.bf16 %v71_v29, %v70_v28  ;;  %v42_v42 = vmul.f32 %v169_v2, %v22_v26  ;;  %v43_v43 = vmul.f32 %v169_v2, %v23_v27 }
   0xa   :  { %v130_v41 = vpack.c.bf16 %v73_v31, %v72_v30  ;;  %v140_v47 = vpack.c.bf16 %v77_v37, %v76_v36  ;;  %v44_v48 = vmul.f32 %v169_v2, %v24_v32  ;;  %v45_v49 = vmul.f32 %v169_v2, %v25_v33 }
   0xb   :  { %v135_v46 = vpack.c.bf16 %v75_v35, %v74_v34  ;;  %126 = vst [vmem:[%s290_s3] sm:$0xff] %v125_v40   ;;  %v62_v50 = vadd.f32 %v203_v3, %v42_v42  ;;  %v63_v51 = vadd.f32 %v203_v3, %v43_v43  ;;  %v46_v52 = vmul.f32 %v169_v2, %v26_v38 }
   0xc   :  { %v47_v53 = vmul.f32 %v169_v2, %v27_v39  ;;  %162 = vst [vmem:[%s290_s3 + $0x8] sm:$0xff] %v130_v41   ;;  %v64_v54 = vadd.f32 %v203_v3, %v44_v48  ;;  %v65_v55 = vadd.f32 %v203_v3, %v45_v49  ;;  %v48_v56 = vmul.f32 %v169_v2, %v28_v44 }
   0xd   :  { %v49_v57 = vmul.f32 %v169_v2, %v29_v45  ;;  %163 = vst [vmem:[%s290_s3 + $0x10] sm:$0xff] %v135_v46   ;;  %v78_v58 = vmax.f32 %v62_v50, 0.0  ;;  %v79_v59 = vmax.f32 %v63_v51, 0.0  ;;  %v66_v60 = vadd.f32 %v203_v3, %v46_v52 }
   0xe   :  { %v67_v61 = vadd.f32 %v203_v3, %v47_v53  ;;  %164 = vst [vmem:[%s290_s3 + $0x18] sm:$0xff] %v140_v47   ;;  %v80_v62 = vmax.f32 %v64_v54, 0.0  ;;  %v81_v63 = vmax.f32 %v65_v55, 0.0  ;;  %v68_v0 = vadd.f32 %v203_v3, %v48_v56 }
   0xf   :  { %v69_v1 = vadd.f32 %v203_v3, %v49_v57  ;;  %v145_v2 = vpack.c.bf16 %v79_v59, %v78_v58  ;;  %v82_v4 = vmax.f32 %v66_v60, 0.0 }
  0x10   :  { %v83_v5 = vmax.f32 %v67_v61, 0.0  ;;  %v150_v6 = vpack.c.bf16 %v81_v63, %v80_v62  ;;  %v84_v7 = vmax.f32 %v68_v0, 0.0 }
  0x11   :  { %v85_v8 = vmax.f32 %v69_v1, 0.0  ;;  %165 = vst [vmem:[%s290_s3 + $0x20] sm:$0xff] %v145_v2  }
  0x12   :  { %v155_v9 = vpack.c.bf16 %v83_v5, %v82_v4  ;;  %166 = vst [vmem:[%s290_s3 + $0x28] sm:$0xff] %v150_v6  }
  0x13   :  { %v160_v10 = vpack.c.bf16 %v85_v8, %v84_v7 }
  0x14   :  { %167 = vst [vmem:[%s290_s3 + $0x30] sm:$0xff] %v155_v9  }
  0x15   :  { %168 = vst [vmem:[%s290_s3 + $0x38] sm:$0xff] %v160_v10  }

// kernel: basic_block_forward.6
= control target key start
LH: loop header
LB: loop body
LE: loop exit
PB: predicated region body
PF: predicated region fallthrough
CT: control target
= control target key end

     0   :  { %vm351_vm0 = vcmask 1040384   ;;  %vm353_vm1 = vcmask 1041408   ;;  %s587_s1 = inlined_call_operand.vmem [shape: bf16[128,128], index: 1, kind: input, shape index: {}]   ;;  %s588_s0 = inlined_call_operand.vmem [shape: bf16[128,128], index: 0, kind: input, shape index: {}]   ;;  %s589_s2 = inlined_call_operand.vmem [shape: f32[128,128], index: 2, kind: output, shape index: {0}]   ;;  %s590_s3 = inlined_call_operand.vmem [shape: f32[1,8,128], index: 3, kind: output, shape index: {1}]  }
   0x1   :  { %v443_v0 = vld [vmem:[%s587_s1 + $0x38] sm:$0xff]  ;;  %v442_v1 = vld [vmem:[%s587_s1 + $0x30] sm:$0xff]  ;;  %v441_v2 = vld [vmem:[%s587_s1 + $0x28] sm:$0xff] }
   0x2   :  { %177 = vmatpush.bf16.msra.mxu0 %v443_v0  ;;  %444 = vmatpush.bf16.msra.mxu1 %v443_v0  ;;  %v440_v3 = vld [vmem:[%s587_s1 + $0x20] sm:$0xff]  ;;  %v439_v4 = vld [vmem:[%s587_s1 + $0x18] sm:$0xff]  ;;  %v438_v5 = vld [vmem:[%s587_s1 + $0x10] sm:$0xff] }
   0x3   :  { %445 = vmatpush.bf16.msra.mxu2 %v443_v0  ;;  %446 = vmatpush.bf16.msra.mxu3 %v443_v0  ;;  %v437_v6 = vld [vmem:[%s587_s1 + $0x8] sm:$0xff]  ;;  %v436_v7 = vld [vmem:[%s587_s1] sm:$0xff]  ;;  %v430_v9 = vld [vmem:[%s588_s0 + $0x10] sm:$0xff] }
   0x4   :  { %v428_v8 = vld [vmem:[%s588_s0] sm:$0xff]  ;;  %v434_v11 = vld [vmem:[%s588_s0 + $0x30] sm:$0xff]  ;;  %v429_v12 = vld [vmem:[%s588_s0 + $0x8] sm:$0xff] }
   0x5   :  { %v432_v10 = vld [vmem:[%s588_s0 + $0x20] sm:$0xff]  ;;  %v431_v13 = vld [vmem:[%s588_s0 + $0x18] sm:$0xff]  ;;  %v433_v14 = vld [vmem:[%s588_s0 + $0x28] sm:$0xff] }
   0x6   :  { %178 = vmatpush.bf16.msra.mxu0 %v442_v1  ;;  %447 = vmatpush.bf16.msra.mxu1 %v442_v1  ;;  %v435_v15 = vld [vmem:[%s588_s0 + $0x38] sm:$0xff] }
   0x7   :  { %448 = vmatpush.bf16.msra.mxu2 %v442_v1  ;;  %449 = vmatpush.bf16.msra.mxu3 %v442_v1 }
   0xa   :  { %179 = vmatpush.bf16.msra.mxu0 %v441_v2  ;;  %450 = vmatpush.bf16.msra.mxu1 %v441_v2 }
   0xb   :  { %451 = vmatpush.bf16.msra.mxu2 %v441_v2  ;;  %452 = vmatpush.bf16.msra.mxu3 %v441_v2 }
   0xe   :  { %180 = vmatpush.bf16.msra.mxu0 %v440_v3  ;;  %453 = vmatpush.bf16.msra.mxu1 %v440_v3 }
   0xf   :  { %454 = vmatpush.bf16.msra.mxu2 %v440_v3  ;;  %455 = vmatpush.bf16.msra.mxu3 %v440_v3 }
  0x12   :  { %181 = vmatpush.bf16.msra.mxu0 %v439_v4  ;;  %456 = vmatpush.bf16.msra.mxu1 %v439_v4 }
  0x13   :  { %457 = vmatpush.bf16.msra.mxu2 %v439_v4  ;;  %458 = vmatpush.bf16.msra.mxu3 %v439_v4 }
  0x16   :  { %182 = vmatpush.bf16.msra.mxu0 %v438_v5  ;;  %459 = vmatpush.bf16.msra.mxu1 %v438_v5 }
  0x17   :  { %460 = vmatpush.bf16.msra.mxu2 %v438_v5  ;;  %461 = vmatpush.bf16.msra.mxu3 %v438_v5 }
  0x1a   :  { %183 = vmatpush.bf16.msra.mxu0 %v437_v6  ;;  %462 = vmatpush.bf16.msra.mxu1 %v437_v6 }
  0x1b   :  { %463 = vmatpush.bf16.msra.mxu2 %v437_v6  ;;  %464 = vmatpush.bf16.msra.mxu3 %v437_v6 }
  0x1e   :  { %184 = vmatpush.bf16.msra.mxu0 %v436_v7  ;;  %465 = vmatpush.bf16.msra.mxu1 %v436_v7 }
  0x1f   :  { %466 = vmatpush.bf16.msra.mxu2 %v436_v7  ;;  %467 = vmatpush.bf16.msra.mxu3 %v436_v7 }
  0x21   :  { %185 = vmatmul.bf16.vlgmr.msra.gmra.mxu0 %v428_v8  ;;  %195 = vmatmul.bf16.vlgmr.msra.gmra.mxu1 %v430_v9 }
  0x22   :  { %205 = vmatmul.bf16.vlgmr.msra.gmra.mxu2 %v432_v10  ;;  %215 = vmatmul.bf16.vlgmr.msra.gmra.mxu3 %v434_v11 }
  0x31   :  { %190 = vmatmul.bf16.gmra.mxu0 %v429_v12  ;;  %200 = vmatmul.bf16.gmra.mxu1 %v431_v13 }
  0x32   :  { %210 = vmatmul.bf16.gmra.mxu2 %v433_v14  ;;  %220 = vmatmul.bf16.gmra.mxu3 %v435_v15 }
  0x9e   :  { %v186_v16 = vpop.f32.mrf.mxu0  ;;  %v196_v17 = vpop.f32.mrf.mxu1 }
  0x9f   :  { %277 = vst [vmem:[%s589_s2] sm:$0xff] %v186_v16  ;;  %v314_v27 = vmul.f32 %v186_v16, %v186_v16  ;;  %v318_v39 = vmul.f32 %v196_v17, %v196_v17 }
  0xa0   :  { %281 = vst [vmem:[%s589_s2 + $0x20] sm:$0xff] %v196_v17 }
  0xa5   :  { %v206_v18 = vpop.f32.mrf.mxu2  ;;  %v216_v19 = vpop.f32.mrf.mxu3 }
  0xa6   :  { %v188_v20 = vpop.f32.mrf.mxu0  ;;  %v198_v21 = vpop.f32.mrf.mxu1  ;;  %285 = vst [vmem:[%s589_s2 + $0x40] sm:$0xff] %v206_v18  ;;  %v322_v53 = vmul.f32 %v206_v18, %v206_v18  ;;  %v326_v1 = vmul.f32 %v216_v19, %v216_v19 }
  0xa7   :  { %278 = vst [vmem:[%s589_s2 + $0x8] sm:$0xff] %v188_v20  ;;  %v315_v26 = vmul.f32 %v188_v20, %v188_v20  ;;  %v293_v28 = vadd.f32 %v188_v20, %v186_v16  ;;  %v319_v42 = vmul.f32 %v198_v21, %v198_v21 }
  0xa8   :  { %282 = vst [vmem:[%s589_s2 + $0x28] sm:$0xff] %v198_v21 }
  0xa9   :  { %289 = vst [vmem:[%s589_s2 + $0x60] sm:$0xff] %v216_v19  ;;  %v330_v30 = vadd.f32 %v315_v26, %v314_v27 }
  0xad   :  { %v208_v22 = vpop.f32.mrf.mxu2  ;;  %v218_v23 = vpop.f32.mrf.mxu3 }
  0xae   :  { %v191_v24 = vpop.f32.mrf.mxu0  ;;  %v201_v25 = vpop.f32.mrf.mxu1  ;;  %286 = vst [vmem:[%s589_s2 + $0x48] sm:$0xff] %v208_v22  ;;  %v323_v56 = vmul.f32 %v208_v22, %v208_v22  ;;  %v327_v4 = vmul.f32 %v218_v23, %v218_v23 }
  0xaf   :  { %279 = vst [vmem:[%s589_s2 + $0x10] sm:$0xff] %v191_v24  ;;  %v316_v29 = vmul.f32 %v191_v24, %v191_v24  ;;  %v294_v31 = vadd.f32 %v293_v28, %v191_v24  ;;  %v320_v45 = vmul.f32 %v201_v25, %v201_v25 }
  0xb0   :  { %283 = vst [vmem:[%s589_s2 + $0x30] sm:$0xff] %v201_v25 }
  0xb1   :  { %290 = vst [vmem:[%s589_s2 + $0x68] sm:$0xff] %v218_v23  ;;  %v331_v36 = vadd.f32 %v330_v30, %v316_v29 }
  0xb5   :  { %v211_v32 = vpop.f32.mrf.mxu2  ;;  %v221_v33 = vpop.f32.mrf.mxu3 }
  0xb6   :  { %v193_v34 = vpop.f32.mrf.mxu0  ;;  %v203_v35 = vpop.f32.mrf.mxu1  ;;  %287 = vst [vmem:[%s589_s2 + $0x50] sm:$0xff] %v211_v32  ;;  %v324_v60 = vmul.f32 %v211_v32, %v211_v32  ;;  %v328_v8 = vmul.f32 %v221_v33, %v221_v33 }
  0xb7   :  { %280 = vst [vmem:[%s589_s2 + $0x18] sm:$0xff] %v193_v34  ;;  %v295_v37 = vadd.f32 %v294_v31, %v193_v34  ;;  %v317_v38 = vmul.f32 %v193_v34, %v193_v34  ;;  %v321_v51 = vmul.f32 %v203_v35, %v203_v35 }
  0xb8   :  { %284 = vst [vmem:[%s589_s2 + $0x38] sm:$0xff] %v203_v35 }
  0xb9   :  { %v296_v40 = vadd.f32 %v295_v37, %v196_v17  ;;  %v332_v41 = vadd.f32 %v331_v36, %v317_v38  ;;  %291 = vst [vmem:[%s589_s2 + $0x70] sm:$0xff] %v221_v33 }
  0xbb   :  { %v333_v43 = vadd.f32 %v332_v41, %v318_v39  ;;  %v297_v44 = vadd.f32 %v296_v40, %v198_v21 }
  0xbd   :  { %v298_v46 = vadd.f32 %v297_v44, %v201_v25  ;;  %v334_v47 = vadd.f32 %v333_v43, %v319_v42  ;;  %v213_v48 = vpop.f32.mrf.mxu2  ;;  %v223_v49 = vpop.f32.mrf.mxu3 }
  0xbe   :  { %288 = vst [vmem:[%s589_s2 + $0x58] sm:$0xff] %v213_v48  ;;  %v325_v0 = vmul.f32 %v213_v48, %v213_v48  ;;  %v329_v12 = vmul.f32 %v223_v49, %v223_v49 }
  0xbf   :  { %v299_v50 = vadd.f32 %v298_v46, %v203_v35  ;;  %v335_v52 = vadd.f32 %v334_v47, %v320_v45  ;;  %292 = vst [vmem:[%s589_s2 + $0x78] sm:$0xff] %v223_v49 }
  0xc1   :  { %v300_v54 = vadd.f32 %v299_v50, %v206_v18  ;;  %v336_v55 = vadd.f32 %v335_v52, %v321_v51 }
  0xc3   :  { %v337_v57 = vadd.f32 %v336_v55, %v322_v53  ;;  %v301_v58 = vadd.f32 %v300_v54, %v208_v22 }
  0xc5   :  { %v302_v59 = vadd.f32 %v301_v58, %v211_v32  ;;  %v338_v61 = vadd.f32 %v337_v57, %v323_v56 }
  0xc7   :  { %v339_v62 = vadd.f32 %v338_v61, %v324_v60  ;;  %v303_v63 = vadd.f32 %v302_v59, %v213_v48 }
  0xc9   :  { %v304_v2 = vadd.f32 %v303_v63, %v216_v19  ;;  %v340_v3 = vadd.f32 %v339_v62, %v325_v0 }
  0xcb   :  { %v341_v5 = vadd.f32 %v340_v3, %v326_v1  ;;  %v305_v6 = vadd.f32 %v304_v2, %v218_v23 }
  0xcd   :  { %v306_v7 = vadd.f32 %v305_v6, %v221_v33  ;;  %v342_v9 = vadd.f32 %v341_v5, %v327_v4 }
  0xcf   :  { %v343_v10 = vadd.f32 %v342_v9, %v328_v8  ;;  %v307_v11 = vadd.f32 %v306_v7, %v223_v49 }
  0xd1   :  { %v308_v13 = vrot.slane %v307_v11, 4  ;;  %v344_v14 = vadd.f32 %v343_v10, %v329_v12 }
  0xd3   :  { %v309_v15 = vadd.f32 %v308_v13, %v307_v11  ;;  %v345_v16 = vrot.slane %v344_v14, 4 }
  0xd5   :  { %v310_v17 = vrot.slane %v309_v15, 2  ;;  %v346_v18 = vadd.f32 %v345_v16, %v344_v14 }
  0xd7   :  { %v311_v20 = vadd.f32 %v310_v17, %v309_v15  ;;  %v347_v21 = vrot.slane %v346_v18, 2 }
  0xd9   :  { %v312_v22 = vrot.slane %v311_v20, 1  ;;  %v348_v19 = vadd.f32 %v347_v21, %v346_v18 }
  0xdb   :  { %v349_v24 = vrot.slane %v348_v19, 1  ;;  %v313_v25 = vadd.f32 %v312_v22, %v311_v20 }
  0xdd   :  { %v350_v23 = vadd.f32 %v349_v24, %v348_v19 }
  0xdf   :  { %v352_v26 = vsel %vm351_vm0, %v313_v25, %v350_v23 }
  0xe0   :  { %v354_v27 = vsel %vm353_vm1, %v352_v26, 0.0 }
  0xe1   :  { %355 = vst [vmem:[%s590_s3] sm:$0xff] %v354_v27 }

// kernel: basic_block_forward.11
= control target key start
LH: loop header
LB: loop body
LE: loop exit
PB: predicated region body
PF: predicated region fallthrough
CT: control target
= control target key end

     0   :  { %s354_s0 = inlined_call_operand.vmem [shape: f32[128,128], index: 0, kind: input, shape index: {}]   ;;  %s355_s1 = inlined_call_operand.vmem [shape: f32[1,128], index: 1, kind: input, shape index: {}]   ;;  %s356_s2 = inlined_call_operand.vmem [shape: f32[1,128], index: 2, kind: input, shape index: {}]   ;;  %s357_s3 = inlined_call_operand.vmem [shape: f32[128,128], index: 3, kind: input, shape index: {}]   ;;  %s358_s4 = inlined_call_operand.vmem [shape: f32[128,128], index: 4, kind: output, shape index: {}]  }
   0x1   :  { %v17_v0 = vld [vmem:[%s354_s0] sm:$0xff]  ;;  %v18_v4 = vld [vmem:[%s354_s0 + $0x8] sm:$0xff]  ;;  %v19_v5 = vld [vmem:[%s354_s0 + $0x10] sm:$0xff] }
   0x2   :  { %v174_v1 = vld [vmem:[%s355_s1] ss:$0 sm:$0xff]  ;;  %v74_v8 = vld [vmem:[%s357_s3 + $0x8] sm:$0xff]  ;;  %v20_v10 = vld [vmem:[%s354_s0 + $0x18] sm:$0xff] }
   0x3   :  { %v179_v2 = vld [vmem:[%s356_s2] ss:$0 sm:$0xff]  ;;  %v37_v3 = vmul.f32 %v174_v1, %v17_v0  ;;  %v38_v7 = vmul.f32 %v174_v1, %v18_v4  ;;  %v39_v9 = vmul.f32 %v174_v1, %v19_v5  ;;  %v75_v12 = vld [vmem:[%s357_s3 + $0x10] sm:$0xff]  ;;  %v40_v13 = vmul.f32 %v174_v1, %v20_v10  ;;  %v22_v15 = vld [vmem:[%s354_s0 + $0x28] sm:$0xff] }
   0x4   :  { %v73_v6 = vld [vmem:[%s357_s3] sm:$0xff]  ;;  %v76_v18 = vld [vmem:[%s357_s3 + $0x18] sm:$0xff]  ;;  %v42_v20 = vmul.f32 %v174_v1, %v22_v15  ;;  %v23_v21 = vld [vmem:[%s354_s0 + $0x30] sm:$0xff] }
   0x5   :  { %v57_v11 = vadd.f32 %v179_v2, %v37_v3  ;;  %v21_v14 = vld [vmem:[%s354_s0 + $0x20] sm:$0xff]  ;;  %v58_v16 = vadd.f32 %v179_v2, %v38_v7  ;;  %v59_v17 = vadd.f32 %v179_v2, %v39_v9  ;;  %v60_v23 = vadd.f32 %v179_v2, %v40_v13  ;;  %v78_v25 = vld [vmem:[%s357_s3 + $0x28] sm:$0xff]  ;;  %v24_v27 = vld [vmem:[%s354_s0 + $0x38] sm:$0xff] }
   0x6   :  { %v41_v19 = vmul.f32 %v174_v1, %v21_v14  ;;  %v77_v24 = vld [vmem:[%s357_s3 + $0x20] sm:$0xff]  ;;  %v43_v26 = vmul.f32 %v174_v1, %v23_v21  ;;  %v62_v31 = vadd.f32 %v179_v2, %v42_v20  ;;  %v79_v32 = vld [vmem:[%s357_s3 + $0x30] sm:$0xff]  ;;  %v44_v37 = vmul.f32 %v174_v1, %v24_v27  ;;  %v26_v38 = vld [vmem:[%s354_s0 + $0x48] sm:$0xff] }
   0x7   :  { %v89_v22 = vadd.f32 %v73_v6, %v57_v11  ;;  %v90_v28 = vadd.f32 %v74_v8, %v58_v16  ;;  %v91_v29 = vadd.f32 %v75_v12, %v59_v17  ;;  %v25_v33 = vld [vmem:[%s354_s0 + $0x40] sm:$0xff]  ;;  %v92_v35 = vadd.f32 %v76_v18, %v60_v23  ;;  %v27_v39 = vld [vmem:[%s354_s0 + $0x50] sm:$0xff]  ;;  %v80_v44 = vld [vmem:[%s357_s3 + $0x38] sm:$0xff] }
   0x8   :  { %v61_v30 = vadd.f32 %v179_v2, %v41_v19  ;;  %v63_v36 = vadd.f32 %v179_v2, %v43_v26  ;;  %v94_v43 = vadd.f32 %v78_v25, %v62_v31  ;;  %v28_v45 = vld [vmem:[%s354_s0 + $0x58] sm:$0xff]  ;;  %v64_v48 = vadd.f32 %v179_v2, %v44_v37  ;;  %v29_v50 = vld [vmem:[%s354_s0 + $0x60] sm:$0xff]  ;;  %v30_v51 = vld [vmem:[%s354_s0 + $0x68] sm:$0xff] }
   0x9   :  { %v105_v34 = vmax.f32 %v89_v22, 0.0  ;;  %v106_v40 = vmax.f32 %v90_v28, 0.0  ;;  %v107_v41 = vmax.f32 %v91_v29, 0.0  ;;  %v108_v46 = vmax.f32 %v92_v35, 0.0  ;;  %v81_v54 = vld [vmem:[%s357_s3 + $0x40] sm:$0xff]  ;;  %v31_v57 = vld [vmem:[%s354_s0 + $0x70] sm:$0xff] }
   0xa   :  { %v93_v42 = vadd.f32 %v77_v24, %v61_v30  ;;  %v95_v47 = vadd.f32 %v79_v32, %v63_v36  ;;  %v45_v49 = vmul.f32 %v174_v1, %v25_v33  ;;  %v110_v53 = vmax.f32 %v94_v43, 0.0  ;;  %v82_v61 = vld [vmem:[%s357_s3 + $0x48] sm:$0xff]  ;;  %v83_v62 = vld [vmem:[%s357_s3 + $0x50] sm:$0xff]  ;;  %v84_v4 = vld [vmem:[%s357_s3 + $0x58] sm:$0xff] }
   0xb   :  { %121 = vst [vmem:[%s358_s4] sm:$0xff] %v105_v34  ;;  %v46_v55 = vmul.f32 %v174_v1, %v26_v38  ;;  %v47_v56 = vmul.f32 %v174_v1, %v27_v39  ;;  %v96_v59 = vadd.f32 %v80_v44, %v64_v48  ;;  %v48_v63 = vmul.f32 %v174_v1, %v28_v45  ;;  %v32_v7 = vld [vmem:[%s354_s0 + $0x78] sm:$0xff]  ;;  %v85_v11 = vld [vmem:[%s357_s3 + $0x60] sm:$0xff]  ;;  %v86_v12 = vld [vmem:[%s357_s3 + $0x68] sm:$0xff] }
   0xc   :  { %122 = vst [vmem:[%s358_s4 + $0x8] sm:$0xff] %v106_v40  ;;  %v109_v52 = vmax.f32 %v93_v42, 0.0  ;;  %v111_v58 = vmax.f32 %v95_v47, 0.0  ;;  %v65_v60 = vadd.f32 %v179_v2, %v45_v49  ;;  %v49_v5 = vmul.f32 %v174_v1, %v29_v50  ;;  %v87_v18 = vld [vmem:[%s357_s3 + $0x70] sm:$0xff]  ;;  %v88_v27 = vld [vmem:[%s357_s3 + $0x78] sm:$0xff] }
   0xd   :  { %123 = vst [vmem:[%s358_s4 + $0x10] sm:$0xff] %v107_v41  ;;  %v66_v0 = vadd.f32 %v179_v2, %v46_v55  ;;  %v67_v3 = vadd.f32 %v179_v2, %v47_v56  ;;  %v50_v6 = vmul.f32 %v174_v1, %v30_v51  ;;  %v112_v8 = vmax.f32 %v96_v59, 0.0 }
   0xe   :  { %124 = vst [vmem:[%s358_s4 + $0x18] sm:$0xff] %v108_v46  ;;  %v97_v9 = vadd.f32 %v81_v54, %v65_v60  ;;  %v68_v10 = vadd.f32 %v179_v2, %v48_v63  ;;  %v51_v13 = vmul.f32 %v174_v1, %v31_v57  ;;  %v69_v16 = vadd.f32 %v179_v2, %v49_v5 }
   0xf   :  { %125 = vst [vmem:[%s358_s4 + $0x20] sm:$0xff] %v109_v52  ;;  %v98_v14 = vadd.f32 %v82_v61, %v66_v0  ;;  %v99_v15 = vadd.f32 %v83_v62, %v67_v3  ;;  %v70_v17 = vadd.f32 %v179_v2, %v50_v6  ;;  %v52_v22 = vmul.f32 %v174_v1, %v32_v7 }
  0x10   :  { %126 = vst [vmem:[%s358_s4 + $0x28] sm:$0xff] %v110_v53  ;;  %v113_v19 = vmax.f32 %v97_v9, 0.0  ;;  %v100_v20 = vadd.f32 %v84_v4, %v68_v10  ;;  %v71_v21 = vadd.f32 %v179_v2, %v51_v13  ;;  %v101_v25 = vadd.f32 %v85_v11, %v69_v16 }
  0x11   :  { %127 = vst [vmem:[%s358_s4 + $0x30] sm:$0xff] %v111_v58  ;;  %v114_v23 = vmax.f32 %v98_v14, 0.0  ;;  %v115_v24 = vmax.f32 %v99_v15, 0.0  ;;  %v102_v26 = vadd.f32 %v86_v12, %v70_v17  ;;  %v72_v1 = vadd.f32 %v179_v2, %v52_v22 }
  0x12   :  { %128 = vst [vmem:[%s358_s4 + $0x38] sm:$0xff] %v112_v8  ;;  %v116_v28 = vmax.f32 %v100_v20, 0.0  ;;  %v103_v29 = vadd.f32 %v87_v18, %v71_v21  ;;  %v117_v30 = vmax.f32 %v101_v25, 0.0 }
  0x13   :  { %129 = vst [vmem:[%s358_s4 + $0x40] sm:$0xff] %v113_v19  ;;  %v118_v31 = vmax.f32 %v102_v26, 0.0  ;;  %v104_v33 = vadd.f32 %v88_v27, %v72_v1 }
  0x14   :  { %130 = vst [vmem:[%s358_s4 + $0x48] sm:$0xff] %v114_v23  ;;  %v119_v32 = vmax.f32 %v103_v29, 0.0 }
  0x15   :  { %131 = vst [vmem:[%s358_s4 + $0x50] sm:$0xff] %v115_v24  ;;  %v120_v2 = vmax.f32 %v104_v33, 0.0 }
  0x16   :  { %132 = vst [vmem:[%s358_s4 + $0x58] sm:$0xff] %v116_v28 }
  0x17   :  { %133 = vst [vmem:[%s358_s4 + $0x60] sm:$0xff] %v117_v30 }
  0x18   :  { %134 = vst [vmem:[%s358_s4 + $0x68] sm:$0xff] %v118_v31 }
  0x19   :  { %135 = vst [vmem:[%s358_s4 + $0x70] sm:$0xff] %v119_v32 }
  0x1a   :  { %136 = vst [vmem:[%s358_s4 + $0x78] sm:$0xff] %v120_v2 }

// kernel: basic_block_forward.9
= control target key start
LH: loop header
LB: loop body
LE: loop exit
PB: predicated region body
PF: predicated region fallthrough
CT: control target
= control target key end

     0   :  { %s214_s0 = inlined_call_operand.vmem [shape: f32[128,128], index: 0, kind: input, shape index: {}]   ;;  %s215_s1 = inlined_call_operand.vmem [shape: f32[1,128], index: 1, kind: input, shape index: {}]   ;;  %s216_s2 = inlined_call_operand.vmem [shape: f32[1,128], index: 2, kind: input, shape index: {}]   ;;  %s217_s3 = inlined_call_operand.vmem [shape: f32[128,128], index: 3, kind: output, shape index: {}]  }
   0x1   :  { %v14_v0 = vld [vmem:[%s214_s0] sm:$0xff]  ;;  %v15_v3 = vld [vmem:[%s214_s0 + $0x8] sm:$0xff]  ;;  %v16_v6 = vld [vmem:[%s214_s0 + $0x10] sm:$0xff] }
   0x2   :  { %v90_v1 = vld [vmem:[%s215_s1] ss:$0 sm:$0xff]  ;;  %v17_v7 = vld [vmem:[%s214_s0 + $0x18] sm:$0xff]  ;;  %v19_v12 = vld [vmem:[%s214_s0 + $0x28] sm:$0xff] }
   0x3   :  { %v91_v2 = vld [vmem:[%s216_s2] ss:$0 sm:$0xff]  ;;  %v34_v4 = vmul.f32 %v90_v1, %v14_v0  ;;  %v35_v5 = vmul.f32 %v90_v1, %v15_v3  ;;  %v36_v9 = vmul.f32 %v90_v1, %v16_v6  ;;  %v37_v10 = vmul.f32 %v90_v1, %v17_v7  ;;  %v20_v13 = vld [vmem:[%s214_s0 + $0x30] sm:$0xff]  ;;  %v21_v14 = vld [vmem:[%s214_s0 + $0x38] sm:$0xff] }
   0x4   :  { %v18_v8 = vld [vmem:[%s214_s0 + $0x20] sm:$0xff]  ;;  %v39_v17 = vmul.f32 %v90_v1, %v19_v12  ;;  %v40_v18 = vmul.f32 %v90_v1, %v20_v13  ;;  %v23_v20 = vld [vmem:[%s214_s0 + $0x48] sm:$0xff]  ;;  %v41_v23 = vmul.f32 %v90_v1, %v21_v14  ;;  %v24_v24 = vld [vmem:[%s214_s0 + $0x50] sm:$0xff] }
   0x5   :  { %v38_v11 = vmul.f32 %v90_v1, %v18_v8  ;;  %v54_v15 = vadd.f32 %v91_v2, %v34_v4  ;;  %v55_v16 = vadd.f32 %v91_v2, %v35_v5  ;;  %v22_v19 = vld [vmem:[%s214_s0 + $0x40] sm:$0xff]  ;;  %v56_v21 = vadd.f32 %v91_v2, %v36_v9  ;;  %v25_v27 = vld [vmem:[%s214_s0 + $0x58] sm:$0xff]  ;;  %v27_v33 = vld [vmem:[%s214_s0 + $0x68] sm:$0xff] }
   0x6   :  { %v57_v22 = vadd.f32 %v91_v2, %v37_v10  ;;  %v42_v26 = vmul.f32 %v90_v1, %v22_v19  ;;  %v59_v28 = vadd.f32 %v91_v2, %v39_v17  ;;  %v43_v29 = vmul.f32 %v90_v1, %v23_v20  ;;  %v26_v30 = vld [vmem:[%s214_s0 + $0x60] sm:$0xff]  ;;  %v28_v36 = vld [vmem:[%s214_s0 + $0x70] sm:$0xff]  ;;  %v29_v39 = vld [vmem:[%s214_s0 + $0x78] sm:$0xff] }
   0x7   :  { %70 = vst [vmem:[%s217_s3] sm:$0xff] %v54_v15  ;;  %v58_v25 = vadd.f32 %v91_v2, %v38_v11  ;;  %v60_v31 = vadd.f32 %v91_v2, %v40_v18  ;;  %v44_v32 = vmul.f32 %v90_v1, %v24_v24  ;;  %v61_v34 = vadd.f32 %v91_v2, %v41_v23 }
   0x8   :  { %71 = vst [vmem:[%s217_s3 + $0x8] sm:$0xff] %v55_v16  ;;  %v45_v35 = vmul.f32 %v90_v1, %v25_v27  ;;  %v62_v37 = vadd.f32 %v91_v2, %v42_v26  ;;  %v46_v38 = vmul.f32 %v90_v1, %v26_v30  ;;  %v63_v40 = vadd.f32 %v91_v2, %v43_v29 }
   0x9   :  { %72 = vst [vmem:[%s217_s3 + $0x10] sm:$0xff] %v56_v21  ;;  %v47_v41 = vmul.f32 %v90_v1, %v27_v33  ;;  %v64_v42 = vadd.f32 %v91_v2, %v44_v32  ;;  %v48_v43 = vmul.f32 %v90_v1, %v28_v36  ;;  %v49_v45 = vmul.f32 %v90_v1, %v29_v39 }
   0xa   :  { %73 = vst [vmem:[%s217_s3 + $0x18] sm:$0xff] %v57_v22  ;;  %v65_v44 = vadd.f32 %v91_v2, %v45_v35  ;;  %v66_v46 = vadd.f32 %v91_v2, %v46_v38 }
   0xb   :  { %74 = vst [vmem:[%s217_s3 + $0x20] sm:$0xff] %v58_v25  ;;  %v67_v47 = vadd.f32 %v91_v2, %v47_v41  ;;  %v68_v48 = vadd.f32 %v91_v2, %v48_v43  ;;  %v69_v49 = vadd.f32 %v91_v2, %v49_v45 }
   0xc   :  { %75 = vst [vmem:[%s217_s3 + $0x28] sm:$0xff] %v59_v28 }
   0xd   :  { %76 = vst [vmem:[%s217_s3 + $0x30] sm:$0xff] %v60_v31 }
   0xe   :  { %77 = vst [vmem:[%s217_s3 + $0x38] sm:$0xff] %v61_v34 }
   0xf   :  { %78 = vst [vmem:[%s217_s3 + $0x40] sm:$0xff] %v62_v37 }
  0x10   :  { %79 = vst [vmem:[%s217_s3 + $0x48] sm:$0xff] %v63_v40 }
  0x11   :  { %80 = vst [vmem:[%s217_s3 + $0x50] sm:$0xff] %v64_v42 }
  0x12   :  { %81 = vst [vmem:[%s217_s3 + $0x58] sm:$0xff] %v65_v44 }
  0x13   :  { %82 = vst [vmem:[%s217_s3 + $0x60] sm:$0xff] %v66_v46 }
  0x14   :  { %83 = vst [vmem:[%s217_s3 + $0x68] sm:$0xff] %v67_v47 }
  0x15   :  { %84 = vst [vmem:[%s217_s3 + $0x70] sm:$0xff] %v68_v48 }
  0x16   :  { %85 = vst [vmem:[%s217_s3 + $0x78] sm:$0xff] %v69_v49 }

</bundles_post_ra>
